<compile_context>
chip_gen: v7x
topology: tpu7x:2x2x1
jax: 0.10.0
libtpu: 0.0.40
codegen_flags: <defaults>
</compile_context>

<pallas_src>
import functools

import jax
import jax.numpy as jnp
from jax.experimental import pallas as pl
from jax.experimental.pallas import tpu as pltpu

LANE_CHOICES = (512, 256, 128)   # lane widths (multiples of 128), widest first
MAX_BLOCK_ROWS = 2048            # (2048, 512) f32 = 4 MiB per input per step
ACC_ROWS = 8                     # f32 sublane multiple -> (8, lane) accumulator
OUT_LANE = 128                   # lane-dense per-split partial-sum block
MIN_BLOCKS_FOR_SPLIT = 8         # engage 2nd TensorCore only with >=4 blocks/core
VMEM_LIMIT_BYTES = 32 * 1024 * 1024


def _round_up(x, m):
    return ((x + m - 1) // m) * m


def _hinge_kernel(dx_ref, dgz_ref, out_ref, acc_ref, *,
                  inv_n, rows, block_rows, acc_rows, steps, lane,
                  mask_from_block):
    """Grid = (nsplit, steps); axis 0 'parallel', axis 1 'arbitrary' (reduction)."""
    s = pl.program_id(0)
    i = pl.program_id(1)

    @pl.when(i == 0)
    def _():
        acc_ref[...] = jnp.zeros_like(acc_ref)

    dx = dx_ref[...].astype(jnp.float32)
    dgz = dgz_ref[...].astype(jnp.float32)
    loss = jnp.maximum(1.0 - dx, 0.0) + jnp.maximum(1.0 + dgz, 0.0)

    def fold(v):
        # (block_rows, lane) -> (acc_rows, lane); sublane-aligned pure VPU adds.
        if block_rows == acc_rows:
            return v
        return v.reshape(block_rows // acc_rows, acc_rows, lane).sum(axis=0)

    if mask_from_block is None:
        # Exact tiling: every block is fully valid, no masking code emitted.
        acc_ref[...] += fold(loss)
    else:
        blk = s * steps + i

        @pl.when(blk < mask_from_block)
        def _():                                  # hot path: no masking
            acc_ref[...] += fold(loss)

        @pl.when(blk >= mask_from_block)
        def _():                                  # trailing over-covered block(s)
            start = blk * block_rows
            row_ids = jax.lax.broadcasted_iota(jnp.int32, (block_rows, lane), 0)
            valid = row_ids < (rows - start)      # block-local, no i32 overflow
            acc_ref[...] += fold(jnp.where(valid, loss, 0.0))

    @pl.when(i == steps - 1)
    def _():
        # Single cross-lane reduction (only 8*lane elems) + constant scale,
        # once per split; broadcast into the lane-dense output block.
        partial = jnp.sum(acc_ref[...]) * inv_n
        out_ref[...] = jnp.full(out_ref.shape, partial, dtype=out_ref.dtype)


@jax.jit
def hinge_loss_d(d_x, d_g_z):
    """Pallas implementation of HingeLossD.forward.

    d_x, d_g_z: discriminator outputs (any shape, same number of elements),
    typically NCHW patch-GAN maps.  Returns a scalar f32 loss.
    """
    assert d_x.size == d_g_z.size, "D_x and D_G_z must have the same size"
    n = d_x.size

    # ---- lane width: pick one that divides n so the reshape is free --------
    lane = None
    for cand in LANE_CHOICES:
        if n % cand == 0:
            lane = cand
            break

    if lane is None:
        # Rare fallback (n not 128-aligned): hinge-neutral pad so the padded
        # elements contribute exactly 0 -> no in-kernel element mask needed.
        # TODO(synk): this still copies the whole array once; unavoidable when
        # n is not 128-aligned and we want a lane-dense 2D slab.
        lane = 128
        padded_n = _round_up(n, lane)
        pad = padded_n - n
        dx_flat = jnp.concatenate(
            [d_x.reshape(-1), jnp.full((pad,), 1.0, dtype=d_x.dtype)])
        dgz_flat = jnp.concatenate(
            [d_g_z.reshape(-1), jnp.full((pad,), -1.0, dtype=d_g_z.dtype)])
    else:
        padded_n = n
        dx_flat = d_x.reshape(-1)
        dgz_flat = d_g_z.reshape(-1)

    rows = padded_n // lane
    dx2 = dx_flat.reshape(rows, lane)       # free reshape (contiguous)
    dgz2 = dgz_flat.reshape(rows, lane)

    # ---- row tiling (all compile-time Python ints) --------------------------
    if rows <= MAX_BLOCK_ROWS:
        # One block == whole array: legal for any dtype (block dims equal array
        # dims), no masking, no split, single grid step.
        nsplit, steps, block_rows = 1, 1, rows
    else:
        block_rows = MAX_BLOCK_ROWS          # multiple of 8/16/32 -> any dtype
        total_blocks = pl.cdiv(rows, block_rows)
        nsplit = 2 if total_blocks >= MIN_BLOCKS_FOR_SPLIT else 1
        steps = pl.cdiv(total_blocks, nsplit)

    covered_rows = nsplit * steps * block_rows
    need_row_mask = covered_rows != rows
    # First block index that may contain invalid (over-covered) rows.
    mask_from_block = (rows // block_rows) if need_row_mask else None

    acc_rows = ACC_ROWS if block_rows % ACC_ROWS == 0 else block_rows

    kernel = functools.partial(
        _hinge_kernel,
        inv_n=1.0 / n,                       # Python float -> baked constant
        rows=rows,
        block_rows=block_rows,
        acc_rows=acc_rows,
        steps=steps,
        lane=lane,
        mask_from_block=mask_from_block,
    )

    last_block = pl.cdiv(rows, block_rows) - 1
    if need_row_mask:
        # Clamp ghost block indices so every DMA stays in bounds; the in-kernel
        # mask (keyed on the unclamped index) zeroes their contribution.
        in_map = lambda s, i: (jnp.minimum(s * steps + i, last_block), 0)
    else:
        in_map = lambda s, i: (s * steps + i, 0)

    out = pl.pallas_call(
        kernel,
        out_shape=jax.ShapeDtypeStruct((nsplit, 8, OUT_LANE), jnp.float32),
        grid_spec=pltpu.PrefetchScalarGridSpec(
            num_scalar_prefetch=0,
            grid=(nsplit, steps),
            in_specs=[
                pl.BlockSpec((block_rows, lane), in_map),
                pl.BlockSpec((block_rows, lane), in_map),
            ],
            # One lane-dense partial per split, resident across the reduction
            # axis (index depends only on the split index).
            out_specs=pl.BlockSpec((1, 8, OUT_LANE), lambda s, i: (s, 0, 0)),
            scratch_shapes=[pltpu.VMEM((acc_rows, lane), jnp.float32)],
        ),
        compiler_params=pltpu.CompilerParams(
            dimension_semantics=("parallel", "arbitrary"),
            vmem_limit_bytes=VMEM_LIMIT_BYTES,
        ),
    )(dx2, dgz2)

    # Add the per-split partials (tiny XLA reduce; nsplit is 1 or 2).
    return jnp.sum(out[:, 0, 0])


def _reference(d_x, d_g_z):
    loss_real = jnp.mean(jnp.maximum(1.0 - d_x.astype(jnp.float32), 0.0))
    loss_fake = jnp.mean(jnp.maximum(1.0 + d_g_z.astype(jnp.float32), 0.0))
    return loss_real + loss_fake


if __name__ == "__main__":
    key = jax.random.PRNGKey(0)
    k1, k2 = jax.random.split(key)

    # Discriminator outputs (patch-GAN style), NCHW.
    d_x = jax.random.normal(k1, (2, 4, 16, 16), dtype=jnp.float32)
    d_g_z = jax.random.normal(k2, (2, 4, 16, 16), dtype=jnp.float32)

    loss = hinge_loss_d(d_x, d_g_z)
    loss = jax.block_until_ready(loss)

    ref = _reference(d_x, d_g_z)
    assert jnp.allclose(loss, ref, rtol=1e-5, atol=1e-5), (loss, ref)

    print("KERNEL_OK")
</pallas_src>

<mosaic_0001>
module attributes {stable_mosaic.version = 11 : i64} {
  func.func @_hinge_kernel(%arg0: i32, %arg1: i32, %arg2: memref<4x512xf32, #tpu.memory_space<vmem>>, %arg3: memref<4x512xf32, #tpu.memory_space<vmem>>, %arg4: memref<1x8x128xf32, #tpu.memory_space<vmem>>, %arg5: memref<4x512xf32, #tpu.memory_space<vmem>>) attributes {dimension_semantics = [#tpu.dimension_semantics<parallel>, #tpu.dimension_semantics<arbitrary>], iteration_bounds = array<i64: 1, 1>, scalar_prefetch = 0 : i64, scratch_operands = 1 : i64, tpu.core_type = #tpu.core_type<tc>, window_params = [{transform_indices = @transform_0, window_bounds = array<i64: 4, 512>}, {transform_indices = @transform_1, window_bounds = array<i64: 4, 512>}, {transform_indices = @transform_2, window_bounds = array<i64: 1, 8, 128>}]} {
    %c0_i32 = arith.constant 0 : i32
    %0 = arith.cmpi eq, %arg1, %c0_i32 : i32
    %1 = arith.extui %0 : i1 to i32
    %c0_i32_0 = arith.constant 0 : i32
    %2 = arith.cmpi ne, %1, %c0_i32_0 : i32
    scf.if %2 {
      %cst_13 = arith.constant 0.000000e+00 : f32
      %20 = vector.broadcast %cst_13 : f32 to vector<4x512xf32>
      %c0_14 = arith.constant 0 : index
      %c0_15 = arith.constant 0 : index
      %21 = vector.load %arg5[%c0_14, %c0_15] : memref<4x512xf32, #tpu.memory_space<vmem>>, vector<4x512xf32>
      tpu.vector_store %arg5[%c0_14, %c0_15], %20 {strides = array<i32>} : memref<4x512xf32, #tpu.memory_space<vmem>>, vector<4x512xf32>,
    } else {
    }
    %c0 = arith.constant 0 : index
    %c0_1 = arith.constant 0 : index
    %3 = vector.load %arg2[%c0, %c0_1] : memref<4x512xf32, #tpu.memory_space<vmem>>, vector<4x512xf32>
    %c0_2 = arith.constant 0 : index
    %c0_3 = arith.constant 0 : index
    %4 = vector.load %arg3[%c0_2, %c0_3] : memref<4x512xf32, #tpu.memory_space<vmem>>, vector<4x512xf32>
    %cst = arith.constant 1.000000e+00 : f32
    %5 = vector.broadcast %cst : f32 to vector<4x512xf32>
    %6 = arith.subf %5, %3 : vector<4x512xf32>
    %cst_4 = arith.constant 0.000000e+00 : f32
    %7 = vector.broadcast %cst_4 : f32 to vector<4x512xf32>
    %8 = arith.maximumf %6, %7 : vector<4x512xf32>
    %cst_5 = arith.constant 1.000000e+00 : f32
    %9 = vector.broadcast %cst_5 : f32 to vector<4x512xf32>
    %10 = arith.addf %9, %4 : vector<4x512xf32>
    %cst_6 = arith.constant 0.000000e+00 : f32
    %11 = vector.broadcast %cst_6 : f32 to vector<4x512xf32>
    %12 = arith.maximumf %10, %11 : vector<4x512xf32>
    %13 = arith.addf %8, %12 : vector<4x512xf32>
    %c0_7 = arith.constant 0 : index
    %c0_8 = arith.constant 0 : index
    %14 = vector.load %arg5[%c0_7, %c0_8] : memref<4x512xf32, #tpu.memory_space<vmem>>, vector<4x512xf32>
    %15 = arith.addf %14, %13 : vector<4x512xf32>
    %c0_9 = arith.constant 0 : index
    %c0_10 = arith.constant 0 : index
    %16 = vector.load %arg5[%c0_9, %c0_10] : memref<4x512xf32, #tpu.memory_space<vmem>>, vector<4x512xf32>
    tpu.vector_store %arg5[%c0_9, %c0_10], %15 {strides = array<i32>} : memref<4x512xf32, #tpu.memory_space<vmem>>, vector<4x512xf32>,
    %c0_i32_11 = arith.constant 0 : i32
    %17 = arith.cmpi eq, %arg1, %c0_i32_11 : i32
    %18 = arith.extui %17 : i1 to i32
    %c0_i32_12 = arith.constant 0 : i32
    %19 = arith.cmpi ne, %18, %c0_i32_12 : i32
    scf.if %19 {
      %c0_13 = arith.constant 0 : index
      %c0_14 = arith.constant 0 : index
      %20 = vector.load %arg5[%c0_13, %c0_14] : memref<4x512xf32, #tpu.memory_space<vmem>>, vector<4x512xf32>
      %21 = vector.shape_cast %20 : vector<4x512xf32> to vector<1x4x512xf32>
      %cst_15 = arith.constant dense<0.000000e+00> : vector<1xf32>
      %22 = vector.multi_reduction <add>, %21, %cst_15 [1, 2] : vector<1x4x512xf32> to vector<1xf32>
      %23 = vector.shape_cast %22 : vector<1xf32> to vector<1x1x1xf32>
      %24 = vector.extract %23[0, 0, 0] : f32 from vector<1x1x1xf32>
      %cst_16 = arith.constant 4.8828125E-4 : f32
      %25 = arith.mulf %24, %cst_16 : f32
      %26 = vector.broadcast %25 : f32 to vector<1x8x128xf32>
      %c0_17 = arith.constant 0 : index
      %c0_18 = arith.constant 0 : index
      %c0_19 = arith.constant 0 : index
      %27 = vector.load %arg4[%c0_17, %c0_18, %c0_19] : memref<1x8x128xf32, #tpu.memory_space<vmem>>, vector<1x8x128xf32>
      tpu.vector_store %arg4[%c0_17, %c0_18, %c0_19], %26 {strides = array<i32>} : memref<1x8x128xf32, #tpu.memory_space<vmem>>, vector<1x8x128xf32>,
    } else {
    }
    return
  }
  func.func @transform_0(%arg0: i32, %arg1: i32) -> (i32, i32) {
    %c1_i32 = arith.constant 1 : i32
    %0 = arith.muli %arg0, %c1_i32 : i32
    %1 = arith.addi %0, %arg1 : i32
    %c0_i32 = arith.constant 0 : i32
    %c0_i32_0 = arith.constant 0 : i32
    return %1, %c0_i32 : i32, i32
  }
  func.func @transform_1(%arg0: i32, %arg1: i32) -> (i32, i32) {
    %c1_i32 = arith.constant 1 : i32
    %0 = arith.muli %arg0, %c1_i32 : i32
    %1 = arith.addi %0, %arg1 : i32
    %c0_i32 = arith.constant 0 : i32
    %c0_i32_0 = arith.constant 0 : i32
    return %1, %c0_i32 : i32, i32
  }
  func.func @transform_2(%arg0: i32, %arg1: i32) -> (i32, i32, i32) {
    %c0_i32 = arith.constant 0 : i32
    %c0_i32_0 = arith.constant 0 : i32
    %c0_i32_1 = arith.constant 0 : i32
    return %arg0, %c0_i32, %c0_i32_0 : i32, i32, i32
  }
}

</mosaic_0001>

<bundles_post_ra>
// kernel: hinge_loss_d.1
= control target key start
LH: loop header
LB: loop body
LE: loop exit
PB: predicated region body
PF: predicated region fallthrough
CT: control target
= control target key end

     0   :  { %vm88_vm0 = vcmask 1043456   ;;  %s156_s0 = inlined_call_operand.vmem [shape: f32[4,512], index: 0, kind: input, shape index: {}]   ;;  %s157_s1 = inlined_call_operand.vmem [shape: f32[4,512], index: 1, kind: input, shape index: {}]   ;;  %s158_s2 = inlined_call_operand.vmem [shape: f32[1,8,128], index: 2, kind: output, shape index: {}]  }
   0x1   :  { %v57_v0 = vld [vmem:[%s156_s0] sm:$0xff]  ;;  %v58_v1 = vld [vmem:[%s156_s0 + $0x8] sm:$0xff] }
   0x2   :  { %v59_v2 = vld [vmem:[%s157_s1] sm:$0xff]  ;;  %v60_v3 = vld [vmem:[%s157_s1 + $0x8] sm:$0xff]  ;;  %v61_v4 = vsub.f32 1.0, %v57_v0  ;;  %v62_v5 = vsub.f32 1.0, %v58_v1 }
   0x3   :  { %v65_v6 = vadd.f32 1.0, %v59_v2  ;;  %v66_v7 = vadd.f32 1.0, %v60_v3 }
   0x4   :  { %v63_v8 = vmax.f32 %v61_v4, 0.0  ;;  %v64_v9 = vmax.f32 %v62_v5, 0.0 }
   0x5   :  { %v67_v10 = vmax.f32 %v65_v6, 0.0  ;;  %v68_v11 = vmax.f32 %v66_v7, 0.0 }
   0x7   :  { %v69_v12 = vadd.f32 %v67_v10, %v63_v8  ;;  %v70_v13 = vadd.f32 %v68_v11, %v64_v9 }
   0x9   :  { %v84_v14 = vcombine.high %v69_v12, %v69_v12  ;;  %v89_v15 = vsel %vm88_vm0, %v69_v12, 0.0  ;;  %v85_v16 = vcombine.high %v70_v13, %v70_v13  ;;  %v92_v18 = vsel %vm88_vm0, %v70_v13, 0.0 }
   0xb   :  { %v90_v17 = vsel %vm88_vm0, %v84_v14, 0.0  ;;  %v94_v20 = vsel %vm88_vm0, %v85_v16, 0.0 }
   0xc   :  { %v91_v19 = vadd.f32 %v90_v17, %v89_v15 }
   0xe   :  { %v93_v21 = vadd.f32 %v92_v18, %v91_v19 }
  0x10   :  { %v95_v22 = vadd.f32 %v94_v20, %v93_v21 }
  0x12   :  { %96 = vadd.xlane.f32.xlu0 %v95_v22 }
  0x9f   :  { %v97_v23 = vpop.xlane.xlu0 %96 }
  0xa0   :  { %v98_v24 = vrot.slane %v97_v23, 4 }
  0xa2   :  { %v99_v25 = vadd.f32 %v98_v24, %v97_v23 }
  0xa4   :  { %v100_v26 = vrot.slane %v99_v25, 2 }
  0xa6   :  { %v101_v27 = vadd.f32 %v100_v26, %v99_v25 }
  0xa8   :  { %v102_v28 = vrot.slane %v101_v27, 1 }
  0xaa   :  { %v103_v29 = vadd.f32 %v102_v28, %v101_v27 }
  0xac   :  { %124 = vpush %v103_v29 }
  0xdd   :  { %s125_s0 = spop %124 }
  0xde   :  { %s105_s1 = smul.f32 0.00048828125, %s125_s0 }
  0xe0   :  { %v106_v30 = vstv %s105_s1 }
  0xe1   :  { %107 = vst [vmem:[%s158_s2] sm:$0xff] %v106_v30 }

</bundles_post_ra>
